<compile_context>
chip_gen: v7x
topology: tpu7x:2x2x1
jax: 0.10.0
libtpu: 0.0.40
codegen_flags: <defaults>
</compile_context>

<pallas_src>
import numpy as np
import jax
import jax.numpy as jnp
from jax.experimental import pallas as pl
from jax.experimental.pallas import tpu as pltpu  # noqa: F401  (TPU backend)


def _identity_kernel(x_ref, o_ref):
    # Pure identity: copy the full tile through VMEM.  The output HBM buffer
    # is aliased to the input, so this is the only data movement besides the
    # in/out tile DMAs.
    o_ref[...] = x_ref[...]


def print_layer(x: jax.Array) -> jax.Array:
    """Pallas implementation of PrintLayer.forward: print(x); return x."""
    # The module's side effect — print the tensor.  Done wrapper-side so it
    # works both eagerly and under jit, and keeps the kernel side-effect free.
    jax.debug.print("{}", x)

    # Lane-dense layout: flatten to (1, N) so the long axis sits on lanes.
    n = int(np.prod(x.shape)) if x.ndim else 1
    x2 = x.reshape(1, n)

    y2 = pl.pallas_call(
        _identity_kernel,
        out_shape=jax.ShapeDtypeStruct(x2.shape, x2.dtype),
        # block_shape == full array shape -> (8,128) divisibility exemption.
        in_specs=[pl.BlockSpec(x2.shape, lambda: (0, 0))],
        out_specs=pl.BlockSpec(x2.shape, lambda: (0, 0)),
        # Identity op: alias input 0 -> output 0 (no second HBM buffer).
        input_output_aliases={0: 0},
    )(x2)

    return y2.reshape(x.shape)


if __name__ == "__main__":
    key = jax.random.PRNGKey(0)
    # Reference script uses x = torch.ones(10, 1); add a deterministic
    # perturbation so the identity check is non-trivial.
    x = jnp.ones((10, 1), dtype=jnp.float32)
    x = x + jax.random.normal(key, (10, 1), dtype=jnp.float32)

    # Host-side copy for the correctness check (the pallas_call aliases /
    # may donate its input buffer via input_output_aliases).
    expected = np.asarray(x)

    y = print_layer(x)
    y = jax.block_until_ready(y)

    assert y.shape == tuple(expected.shape) and y.dtype == jnp.float32
    assert np.array_equal(np.asarray(y), expected)
    print("KERNEL_OK")
</pallas_src>

<mosaic_0001>
module attributes {stable_mosaic.version = 11 : i64} {
  func.func @_identity_kernel(%arg0: memref<1x10xf32, #tpu.memory_space<vmem>>, %arg1: memref<1x10xf32, #tpu.memory_space<vmem>>) attributes {dimension_semantics = [], scalar_prefetch = 0 : i64, scratch_operands = 0 : i64, tpu.core_type = #tpu.core_type<tc>} {
    %c0 = arith.constant 0 : index
    %c0_0 = arith.constant 0 : index
    %0 = vector.load %arg0[%c0, %c0_0] : memref<1x10xf32, #tpu.memory_space<vmem>>, vector<1x10xf32>
    %c0_1 = arith.constant 0 : index
    %c0_2 = arith.constant 0 : index
    %1 = vector.load %arg1[%c0_1, %c0_2] : memref<1x10xf32, #tpu.memory_space<vmem>>, vector<1x10xf32>
    tpu.vector_store %arg1[%c0_1, %c0_2], %0 {strides = array<i32>} : memref<1x10xf32, #tpu.memory_space<vmem>>, vector<1x10xf32>,
    return
  }
}

</mosaic_0001>

<bundles_post_ra>
// kernel: tpu_custom_call.1
= control target key start
LH: loop header
LB: loop body
LE: loop exit
PB: predicated region body
PF: predicated region fallthrough
CT: control target
= control target key end

     0   :  { %6 = vsyncpa [#allocation3], 0  ;;  %s125_s0 = inlined_call_operand.hbm [shape: f32[1,10], index: 0, kind: input, shape index: {}, may-alias: {0,1}]   ;;  %s126_s1 = inlined_call_operand.hbm [shape: f32[1,10], index: 1, kind: output, shape index: {}, may-alias: {0,1}]  }
   0x1   :  { %7 = vsyncpa [#allocation4], 0  ;;  %s89_s6 = smov [#allocation2]   ;;  %s41_s10 = scalar_lea.hbm %s125_s0, 16 }
   0x2   :  { %s14_s7 = sshll.u32 %s89_s6, 4  ;;  %p42_p0 = scmp.ne.s32.totalorder %s125_s0, %s41_s10  ;;  %s15_s7 = int_to_ptr.vmem [resolvable:$true] %s14_s7 }
   0x3   :  { %p45_p1 = scmp.lt.u32.totalorder %s41_s10, %s125_s0 }
   0x5   :  { %p47_p2 = pnand %p45_p1, %p42_p0 }
   0x7   :  { %50 = shalt.err (!%p47_p2)
}
   0x8   :  { %s51_s15 = scalar_lea.vmem %s15_s7, 16  ;;  %s55_s16 = scalar_lea.vmem %s15_s7, 32 }
   0x9   :  { %p52_p3 = scmp.ne.s32.totalorder %s15_s7, %s51_s15  ;;  %p56_p4 = scmp.lt.s32.totalorder %s15_s7, %s15_s7 }
   0xa   :  { %p57_p5 = scmp.lt.s32.totalorder %s55_s16, %s51_s15 }
   0xc   :  { %p58_p6 = por %p57_p5, %p56_p4 }
   0xe   :  { %p59_p7 = pnand %p58_p6, %p52_p3 }
  0x10   :  { %62 = shalt.err (!%p59_p7)
}
  0x11   :  { %17 = dma.hbm_to_vmem [thread:$0]  %s125_s0, 16, %s15_s7, [#allocation3]  }
  0x12   :  { %85 = dma.done.wait [#allocation3], 16  }
  0x13   :  { %86 = vsyncadd [#allocation3], 4294967280  ;;  %s90_s19 = smov [#allocation5]   ;;  %vm22_vm0 = vcmask 73728   ;;  %v21_v0 = vld [vmem:[#allocation2] sm:$0x1] }
  0x14   :  { %s30_s20 = sshll.u32 %s90_s19, 4  ;;  %23 = vst.msk [vmem:[#allocation5] sm:$0x1] %vm22_vm0, %v21_v0  ;;  %s31_s20 = int_to_ptr.vmem [resolvable:$true] %s30_s20 }
  0x15   :  { %s63_s21 = scalar_lea.vmem %s31_s20, 16  ;;  %s67_s22 = scalar_lea.vmem %s31_s20, 32 }
  0x16   :  { %p64_p8 = scmp.ne.s32.totalorder %s31_s20, %s63_s21  ;;  %p68_p9 = scmp.lt.s32.totalorder %s31_s20, %s31_s20 }
  0x17   :  { %p69_p10 = scmp.lt.s32.totalorder %s67_s22, %s63_s21 }
  0x19   :  { %p70_p11 = por %p69_p10, %p68_p9 }
  0x1b   :  { %p71_p12 = pnand %p70_p11, %p64_p8 }
  0x1d   :  { %74 = shalt.err (!%p71_p12)
}
  0x1e   :  { %s75_s0 = scalar_lea.hbm %s126_s1, 16 }
  0x1f   :  { %p76_p13 = scmp.ne.s32.totalorder %s126_s1, %s75_s0  ;;  %p79_p0 = scmp.lt.u32.totalorder %s75_s0, %s126_s1 }
  0x21   :  { %p81_p1 = pnand %p79_p0, %p76_p13 }
  0x23   :  { %84 = shalt.err (!%p81_p1)
}
  0x24   :  { %33 = dma.vmem_to_hbm [thread:$0]  %s31_s20, 16, %s126_s1, [#allocation4]  }
  0x25   :  { %87 = dma.done.wait [#allocation4], 16  }
  0x26   :  { %88 = vsyncadd [#allocation4], 4294967280 }
  0x27   :  { %37 = vsyncpa [#allocation3], 1 }
  0x28   :  { %38 = vsyncpa [#allocation4], 1 }

</bundles_post_ra>
